<compile_context>
chip_gen: v7x
topology: tpu7x:2x2x1
jax: 0.10.0
libtpu: 0.0.40
codegen_flags: <defaults>
</compile_context>

<pallas_src>
import jax
import jax.numpy as jnp
from jax import lax
from jax.experimental import pallas as pl
from jax.experimental.pallas import tpu as pltpu


def _round_up(x, m):
    return (x + m - 1) // m * m


def _round_down(x, m):
    return (x // m) * m


def _cdiv(a, b):
    return (a + b - 1) // b


def value_net_kernel(x_ref, w1_ref, b1_ref, w2_ref, b2_ref, out_ref):
    # x:  (TB, D)   w1: (D, H)   b1: (1, H)   w2: (1, H)   b2: (1,) in SMEM
    # out: (1, TB)  -- lane-dense value row for this batch tile.
    # Layer 1 on the MXU with f32 accumulation; bias + ReLU on the VPU in f32.
    h = jnp.dot(x_ref[...], w1_ref[...], preferred_element_type=jnp.float32)
    h = jnp.maximum(h + b1_ref[...], 0.0)
    # Value head (H -> 1) as (1, H) contracted against (TB, H) on the MXU
    # (same rhs-transposed dot as flash-attention's q @ k^T).  Result (1, TB)
    # is directly lane-dense -> unmasked stores, contiguous writeback.
    v_row = lax.dot_general(
        w2_ref[...], h,
        dimension_numbers=(((1,), (1,)), ((), ())),
        preferred_element_type=jnp.float32,
    )
    out_ref[...] = (v_row + b2_ref[0]).astype(out_ref.dtype)


def _choose_batch_tile(B, D, itemsize, x_vmem_budget_bytes):
    """Batch tile from a VMEM budget, lane-padding aware, multiple of 8."""
    d_pad = _round_up(max(D, 1), 128)
    # budget covers the double-buffered x tile: 2 * tb * d_pad * itemsize.
    tb = x_vmem_budget_bytes // (2 * d_pad * itemsize)
    tb = max(8, _round_down(int(tb), 8))
    # Keep >= 2 tiles so v7x's two TensorCores both get work (no-op on 1-TC chips).
    two_tile_cap = _round_up(_cdiv(B, 2), 8)
    tb = min(tb, two_tile_cap, _round_up(B, 8))
    return max(8, tb)


def value_network_forward(x, w1, b1, w2, b2, *,
                          x_vmem_budget_bytes=8 * 1024 * 1024):
    """Pallas forward pass of ValueNetwork. Returns shape (batch,).

    x:  (B, D) activations (pass bf16 directly to halve streamed HBM bytes;
        the wrapper does NOT cast x -- a wrapper-side cast would round-trip
        the whole input through HBM).
    w1: (D, H), b1: (., H)   -- shared Linear, stored input-major (W1.T)
    w2: (H, 1), b2: (., 1)   -- value head
    """
    B, D = x.shape
    H = w1.shape[1]

    w1 = w1.astype(x.dtype)                       # stream-dtype weights (tiny cast)
    b1 = b1.reshape(1, H).astype(jnp.float32)     # bias/ReLU stay f32 (v5e-safe)
    w2_row = w2.reshape(1, H).astype(jnp.float32)  # lane-dense head row
    b2_s = b2.reshape(1).astype(jnp.float32)      # scalar in SMEM

    itemsize = x.dtype.itemsize
    tb = _choose_batch_tile(B, D, itemsize, x_vmem_budget_bytes)
    num_tiles = _cdiv(B, tb)

    # Explicit, generation-aware VMEM limit (<= 48 MiB is safe on v5e/v6e/v7x).
    d_pad = _round_up(D, 128)
    vmem_bytes = (
        2 * tb * d_pad * itemsize              # double-buffered x tile (lane padded)
        + 2 * 8 * tb * 4                       # (1, tb) f32 out tile (sublane padded)
        + 2 * _round_up(D, 8) * H * itemsize   # resident w1
        + 4 * 8 * H * 4                        # b1 + w2 rows
        + (2 << 20)                            # headroom
    )
    vmem_bytes = int(min(max(vmem_bytes, 16 * 1024 * 1024), 48 * 1024 * 1024))

    out = pl.pallas_call(
        value_net_kernel,
        out_shape=jax.ShapeDtypeStruct((num_tiles, 1, tb), jnp.float32),
        grid_spec=pltpu.PrefetchScalarGridSpec(
            num_scalar_prefetch=0,
            grid=(num_tiles,),                         # cdiv grid: no jnp.pad copy of x
            in_specs=[
                pl.BlockSpec((tb, D), lambda i: (i, 0)),   # stream x tiles
                pl.BlockSpec((D, H), lambda i: (0, 0)),    # w1 resident
                pl.BlockSpec((1, H), lambda i: (0, 0)),    # b1 resident
                pl.BlockSpec((1, H), lambda i: (0, 0)),    # w2 row resident
                pl.BlockSpec(memory_space=pltpu.MemorySpace.SMEM),  # b2 scalar
            ],
            out_specs=pl.BlockSpec((None, 1, tb), lambda i: (i, 0, 0)),
        ),
        compiler_params=pltpu.CompilerParams(
            dimension_semantics=("parallel",),   # shard batch tiles across TCs on v7x
            vmem_limit_bytes=vmem_bytes,
        ),
    )(x, w1, b1, w2_row, b2_s)

    # Flatten the lane-dense (num_tiles, 1, tb) slab back to (B,) — this also
    # discards any garbage values produced from the ragged last x block.
    return out.reshape(num_tiles * tb)[:B]


def init_params(key, input_dim, hidden_dim=128):
    """Deterministic parameter init (PyTorch-style uniform fan-in bounds)."""
    k1, k2, k3, k4 = jax.random.split(key, 4)
    bound1 = 1.0 / jnp.sqrt(input_dim)
    bound2 = 1.0 / jnp.sqrt(hidden_dim)
    w1 = jax.random.uniform(k1, (input_dim, hidden_dim), jnp.float32,
                            -bound1, bound1)
    b1 = jax.random.uniform(k2, (1, hidden_dim), jnp.float32, -bound1, bound1)
    w2 = jax.random.uniform(k3, (hidden_dim, 1), jnp.float32, -bound2, bound2)
    b2 = jax.random.uniform(k4, (1, 1), jnp.float32, -bound2, bound2)
    return w1, b1, w2, b2


if __name__ == "__main__":
    key = jax.random.PRNGKey(0)
    kx, kp, kx2 = jax.random.split(key, 3)

    batch = 8
    input_dim = 16
    hidden_dim = 128

    x = jax.random.normal(kx, (batch, input_dim), jnp.float32)
    w1, b1, w2, b2 = init_params(kp, input_dim, hidden_dim)

    # Pure-JAX reference.
    h_ref = jnp.maximum(x @ w1 + b1, 0.0)
    v_ref = (h_ref @ w2 + b2)[:, 0]

    # 1) f32 path (tight check), single tile.
    value = value_network_forward(x, w1, b1, w2, b2)
    jax.block_until_ready(value)
    assert value.shape == (batch,)
    assert jnp.allclose(value, v_ref, atol=1e-5, rtol=1e-5)

    # 2) Ragged-last-block path: batch not a multiple of the tile, >= 2 tiles
    #    (the two-tile cap forces tb=8 here, so the grid is (2,) with a ragged
    #    last x block handled by Pallas edge padding / wrapper slice).
    x2 = jax.random.normal(kx2, (13, input_dim), jnp.float32)
    value2 = value_network_forward(x2, w1, b1, w2, b2)
    jax.block_until_ready(value2)
    h2 = jnp.maximum(x2 @ w1 + b1, 0.0)
    v2_ref = (h2 @ w2 + b2)[:, 0]
    assert value2.shape == (13,)
    assert jnp.allclose(value2, v2_ref, atol=1e-5, rtol=1e-5)

    # 3) bf16-streamed input: caller provides bf16 x directly (no wrapper cast),
    #    halving streamed bytes; accumulation stays f32 (relaxed tolerance from
    #    input quantization only).
    value_bf16 = value_network_forward(x.astype(jnp.bfloat16), w1, b1, w2, b2)
    jax.block_until_ready(value_bf16)
    assert value_bf16.shape == (batch,)
    assert jnp.allclose(value_bf16, v_ref, atol=5e-2, rtol=5e-2)

    print("KERNEL_OK")
</pallas_src>

<mosaic_0001>
module attributes {stable_mosaic.version = 11 : i64} {
  func.func @value_net_kernel(%arg0: i32, %arg1: memref<8x16xf32, #tpu.memory_space<vmem>>, %arg2: memref<16x128xf32, #tpu.memory_space<vmem>>, %arg3: memref<1x128xf32, #tpu.memory_space<vmem>>, %arg4: memref<1x128xf32, #tpu.memory_space<vmem>>, %arg5: memref<1xf32, #tpu.memory_space<smem>>, %arg6: memref<1x1x8xf32, #tpu.memory_space<vmem>>) attributes {dimension_semantics = [#tpu.dimension_semantics<parallel>], iteration_bounds = array<i64: 1>, scalar_prefetch = 0 : i64, scratch_operands = 0 : i64, tpu.core_type = #tpu.core_type<tc>, window_params = [{transform_indices = @transform_0, window_bounds = array<i64: 8, 16>}, {pipeline_mode = #tpu.pipeline_mode<synchronous>, transform_indices = @transform_1, window_bounds = array<i64: 16, 128>}, {pipeline_mode = #tpu.pipeline_mode<synchronous>, transform_indices = @transform_2, window_bounds = array<i64: 1, 128>}, {pipeline_mode = #tpu.pipeline_mode<synchronous>, transform_indices = @transform_3, window_bounds = array<i64: 1, 128>}, {transform_indices = @transform_4, window_bounds = array<i64: 1>}, {transform_indices = @transform_5, window_bounds = array<i64: 1, 1, 8>}]} {
    %c0 = arith.constant 0 : index
    %c0_0 = arith.constant 0 : index
    %0 = vector.load %arg1[%c0, %c0_0] : memref<8x16xf32, #tpu.memory_space<vmem>>, vector<8x16xf32>
    %c0_1 = arith.constant 0 : index
    %c0_2 = arith.constant 0 : index
    %1 = vector.load %arg2[%c0_1, %c0_2] : memref<16x128xf32, #tpu.memory_space<vmem>>, vector<16x128xf32>
    %cst = arith.constant dense<0.000000e+00> : vector<8x128xf32>
    %2 = tpu.matmul %0, %1, %cst {dimension_numbers = #tpu.dot_dimension_numbers<[1], [0], [0], [1], [0, 0, 1, 1], [], []>} : vector<8x16xf32>, vector<16x128xf32>, vector<8x128xf32> -> vector<8x128xf32>
    %c0_3 = arith.constant 0 : index
    %c0_4 = arith.constant 0 : index
    %3 = vector.load %arg3[%c0_3, %c0_4] : memref<1x128xf32, #tpu.memory_space<vmem>>, vector<1x128xf32>
    %4 = vector.broadcast %3 : vector<1x128xf32> to vector<8x128xf32>
    %5 = arith.addf %2, %4 : vector<8x128xf32>
    %cst_5 = arith.constant 0.000000e+00 : f32
    %6 = vector.broadcast %cst_5 : f32 to vector<8x128xf32>
    %7 = arith.maximumf %5, %6 : vector<8x128xf32>
    %c0_6 = arith.constant 0 : index
    %c0_7 = arith.constant 0 : index
    %8 = vector.load %arg4[%c0_6, %c0_7] : memref<1x128xf32, #tpu.memory_space<vmem>>, vector<1x128xf32>
    %cst_8 = arith.constant dense<0.000000e+00> : vector<1x8xf32>
    %9 = tpu.matmul %8, %7, %cst_8 {dimension_numbers = #tpu.dot_dimension_numbers<[1], [1], [0], [0], [0, 0, 1, 0], [], []>} : vector<1x128xf32>, vector<8x128xf32>, vector<1x8xf32> -> vector<1x8xf32>
    %c0_9 = arith.constant 0 : index
    %10 = memref.load %arg5[%c0_9] : memref<1xf32, #tpu.memory_space<smem>>
    %11 = vector.broadcast %10 : f32 to vector<1x8xf32>
    %12 = arith.addf %9, %11 : vector<1x8xf32>
    %c0_10 = arith.constant 0 : index
    %c0_11 = arith.constant 0 : index
    %c0_12 = arith.constant 0 : index
    %13 = vector.load %arg6[%c0_10, %c0_11, %c0_12] : memref<1x1x8xf32, #tpu.memory_space<vmem>>, vector<1x1x8xf32>
    %14 = vector.shape_cast %13 : vector<1x1x8xf32> to vector<1x8xf32>
    %15 = vector.shape_cast %12 : vector<1x8xf32> to vector<1x1x8xf32>
    tpu.vector_store %arg6[%c0_10, %c0_11, %c0_12], %15 {strides = array<i32>} : memref<1x1x8xf32, #tpu.memory_space<vmem>>, vector<1x1x8xf32>,
    return
  }
  func.func @transform_0(%arg0: i32) -> (i32, i32) {
    %c0_i32 = arith.constant 0 : i32
    %c0_i32_0 = arith.constant 0 : i32
    return %arg0, %c0_i32 : i32, i32
  }
  func.func @transform_1(%arg0: i32) -> (i32, i32) {
    %c0_i32 = arith.constant 0 : i32
    %c0_i32_0 = arith.constant 0 : i32
    %c0_i32_1 = arith.constant 0 : i32
    return %c0_i32, %c0_i32_0 : i32, i32
  }
  func.func @transform_2(%arg0: i32) -> (i32, i32) {
    %c0_i32 = arith.constant 0 : i32
    %c0_i32_0 = arith.constant 0 : i32
    %c0_i32_1 = arith.constant 0 : i32
    return %c0_i32, %c0_i32_0 : i32, i32
  }
  func.func @transform_3(%arg0: i32) -> (i32, i32) {
    %c0_i32 = arith.constant 0 : i32
    %c0_i32_0 = arith.constant 0 : i32
    %c0_i32_1 = arith.constant 0 : i32
    return %c0_i32, %c0_i32_0 : i32, i32
  }
  func.func @transform_4(%arg0: i32) -> i32 {
    %c0_i32 = arith.constant 0 : i32
    %c0_i32_0 = arith.constant 0 : i32
    return %c0_i32 : i32
  }
  func.func @transform_5(%arg0: i32) -> (i32, i32, i32) {
    %c0_i32 = arith.constant 0 : i32
    %c0_i32_0 = arith.constant 0 : i32
    %c0_i32_1 = arith.constant 0 : i32
    return %arg0, %c0_i32, %c0_i32_0 : i32, i32, i32
  }
}

</mosaic_0001>

<bundles_post_ra>
// kernel: tpu_custom_call.1
= control target key start
LH: loop header
LB: loop body
LE: loop exit
PB: predicated region body
PF: predicated region fallthrough
CT: control target
= control target key end

     0   :  { %11 = vsyncpa [#allocation4], 0  ;;  %s416_s0 = inlined_call_operand.hbm [shape: f32[8,16], index: 0, kind: input, shape index: {}]   ;;  %s417_s1 = inlined_call_operand.hbm [shape: f32[16,128], index: 1, kind: input, shape index: {}]   ;;  %s418_s2 = inlined_call_operand.vmem [shape: f32[1,128], index: 2, kind: input, shape index: {}]   ;;  %s419_s3 = inlined_call_operand.vmem [shape: f32[1,128], index: 3, kind: input, shape index: {}]   ;;  %s420_s4 = inlined_call_operand.<no memory space> [shape: f32[1], index: 4, kind: input, shape index: {}]   ;;  %s421_s5 = inlined_call_operand.hbm [shape: f32[1,1,8], index: 5, kind: output, shape index: {}]  }
   0x1   :  { %12 = vsyncpa [#allocation7], 0 }
   0x2   :  { %13 = vsyncpa [#allocation5], 0  ;;  %s326_s18 = smov [#allocation3]   ;;  %s327_s20 = smov [#allocation6]  }
   0x3   :  { %s20_s19 = sshll.u32 %s326_s18, 4  ;;  %s29_s21 = sshll.u32 %s327_s20, 4  ;;  %s21_s19 = int_to_ptr.vmem [resolvable:$true] %s20_s19  ;;  %s364_s21 = int_to_ptr.vmem [resolvable:$true] %s29_s21 }
   0x4   :  { %s254_s24 = scalar_lea.hbm %s416_s0, 128 }
   0x5   :  { %p255_p0 = scmp.ne.s32.totalorder %s416_s0, %s254_s24  ;;  %p258_p1 = scmp.lt.u32.totalorder %s254_s24, %s416_s0 }
   0x7   :  { %p260_p2 = pnand %p258_p1, %p255_p0 }
   0x9   :  { %263 = shalt.err (!%p260_p2)
}
   0xa   :  { %s264_s29 = scalar_lea.vmem %s21_s19, 128  ;;  %p269_p4 = scmp.lt.s32.totalorder %s21_s19, %s21_s19 }
   0xb   :  { %p265_p3 = scmp.ne.s32.totalorder %s21_s19, %s264_s29  ;;  %p270_p5 = scmp.lt.s32.totalorder %s264_s29, %s264_s29 }
   0xd   :  { %p271_p6 = por %p270_p5, %p269_p4 }
   0xf   :  { %p272_p7 = pnand %p271_p6, %p265_p3 }
  0x11   :  { %275 = shalt.err (!%p272_p7)
}
  0x12   :  { %23 = dma.hbm_to_vmem [thread:$0]  %s416_s0, 128, %s21_s19, [#allocation4]  }
  0x13   :  { %s276_s9 = scalar_lea.hbm %s417_s1, 256 }
  0x14   :  { %p277_p8 = scmp.ne.s32.totalorder %s417_s1, %s276_s9  ;;  %p280_p9 = scmp.lt.u32.totalorder %s276_s9, %s417_s1 }
  0x16   :  { %p282_p10 = pnand %p280_p9, %p277_p8 }
  0x18   :  { %285 = shalt.err (!%p282_p10)
}
  0x19   :  { %s286_s14 = scalar_lea.vmem %s364_s21, 256  ;;  %p291_p12 = scmp.lt.s32.totalorder %s364_s21, %s364_s21 }
  0x1a   :  { %p287_p11 = scmp.ne.s32.totalorder %s364_s21, %s286_s14  ;;  %p292_p13 = scmp.lt.s32.totalorder %s286_s14, %s286_s14 }
  0x1c   :  { %p293_p0 = por %p292_p13, %p291_p12 }
  0x1e   :  { %p294_p1 = pnand %p293_p0, %p287_p11 }
  0x20   :  { %297 = shalt.err (!%p294_p1)
}
  0x21   :  { %s328_s0 = smov 128   ;;  %s329_s15 = smov 8  }
  0x22   :  { %35 = dma.hbm_to_vmem [thread:$0]  %s417_s1, 256, %s364_s21, [#allocation7], %s328_s0, %s328_s0, %s329_s15  }
  0x23   :  { %320 = dma.done.wait [#allocation4], 128  }
  0x24   :  { %321 = vsyncadd [#allocation4], 4294967168 }
  0x25   :  { %322 = dma.done.wait [#allocation7], 256  }
  0x26   :  { %323 = vsyncadd [#allocation7], 4294967040  ;;  %v330_v0 = vmov 0.0|0.0   ;;  %vm331_vm0 = vmmov 0   ;;  %v332_v1 = vmov 0.0   ;;  %v49_v2 = vld [vmem:[#allocation6] sm:$0xff]  ;;  %v135_v12 = vstv %s420_s4 }
  0x27   :  { %243 = vmatprep.subr.bf16.mxu0 %v330_v0  ;;  %235 = vmatprep.mubr.msk.f32.mxu0 %vm331_vm0, %v332_v1  ;;  %v50_v3 = vld [vmem:[#allocation6 + $0x8] sm:$0xff]  ;;  %v48_v5 = vld [vmem:[#allocation3] sm:$0xff]  ;;  %vm58_vm1 = vcmask 130048   ;;  %s333_s23 = smov [#allocation8]   ;;  %vm206_vm2 = vcmask 57344  }
  0x28   :  { %238 = vmatprep.subr.mxu1 %v332_v1  ;;  %240 = vmatprep.mubr.msk.f32.mxu1 %vm331_vm0, %v332_v1  ;;  %v244_v4 = vpack.c.bf16 %v50_v3, %v49_v2  ;;  %v224_v6 = vld [vmem:[%s418_s2] ss:$0 sm:$0xff]  ;;  %s214_s24 = sshll.u32 %s333_s23, 4  ;;  %s215_s24 = int_to_ptr.vmem [resolvable:$true] %s214_s24 }
  0x29   :  { %v133_v11 = vld [vmem:[%s419_s3] sm:$0x1]  ;;  %s298_s2 = scalar_lea.vmem %s215_s24, 16  ;;  %s302_s25 = scalar_lea.vmem %s215_s24, 32 }
  0x2a   :  { %245 = vmatpush3.bf16.msra.mxu0 %v244_v4  ;;  %p299_p2 = scmp.ne.s32.totalorder %s215_s24, %s298_s2  ;;  %p303_p3 = scmp.lt.s32.totalorder %s215_s24, %s215_s24 }
  0x2b   :  { %p304_p4 = scmp.lt.s32.totalorder %s302_s25, %s298_s2 }
  0x2d   :  { %236 = vmatmul.mubr.msk.f32.vlgmr.msra.gmra.mrb[0].mxu0 %vm58_vm1, %v48_v5  ;;  %p305_p5 = por %p304_p4, %p303_p3 }
  0x2f   :  { %p306_p6 = pnand %p305_p5, %p299_p2 }
 0x100   :  { %v128_v7 = vpop.f32.mrb[0].mxu0 }
 0x101   :  { %v129_v8 = vadd.f32 %v224_v6, %v128_v7  ;;  %v237_v9 = vpop.f32.mrb[1].mxu0 }
 0x103   :  { %v132_v10 = vmax.f32 %v129_v8, 0.0 }
 0x105   :  { %239 = vmatpush3.xpose.msra.mxu1 %v132_v10 }
 0x108   :  { %241 = vmatmul.mubr.f32.vlgmr.msra.gmra.mrb[0].mxu1 %v133_v11 }
 0x1db   :  { %v202_v13 = vpop.f32.mrb[0].mxu1 }
 0x1dc   :  { %v203_v14 = vadd.f32 %v202_v13, %v135_v12  ;;  %v242_v15 = vpop.f32.mrb[1].mxu1 }
 0x1de   :  { %207 = vst.msk [vmem:[#allocation8] sm:$0x1] %vm206_vm2, %v203_v14 }
 0x1df   :  { %309 = shalt.err (!%p306_p6)
}
 0x1e0   :  { %s310_s4 = scalar_lea.hbm %s421_s5, 16 }
 0x1e1   :  { %p311_p7 = scmp.ne.s32.totalorder %s421_s5, %s310_s4  ;;  %p314_p8 = scmp.lt.u32.totalorder %s310_s4, %s421_s5 }
 0x1e3   :  { %p316_p9 = pnand %p314_p8, %p311_p7 }
 0x1e5   :  { %319 = shalt.err (!%p316_p9)
}
 0x1e6   :  { %217 = dma.vmem_to_hbm [thread:$0]  %s215_s24, 16, %s421_s5, [#allocation5]  }
 0x1e7   :  { %324 = dma.done.wait [#allocation5], 16  }
 0x1e8   :  { %325 = vsyncadd [#allocation5], 4294967280 }
 0x1e9   :  { %221 = vsyncpa [#allocation4], 1 }
 0x1ea   :  { %222 = vsyncpa [#allocation7], 1 }
 0x1eb   :  { %223 = vsyncpa [#allocation5], 1 }

</bundles_post_ra>
